<compile_context>
chip_gen: v6e
topology: v6e:2x2x1
jax: 0.10.0
libtpu: 0.0.40
codegen_flags: <defaults>
</compile_context>

<pallas_src>
import functools

import jax
import jax.numpy as jnp
from jax import lax
from jax.experimental import pallas as pl
from jax.experimental.pallas import tpu as pltpu


def _round_up(x: int, m: int) -> int:
    return ((x + m - 1) // m) * m


def graphconv_kernel(
    ego_ref,      # VMEM (Np, Dp) f32  -- initial embeddings (constant block)
    head_ref,     # VMEM (1, tE) int32 -- head indices of this edge chunk
    tail_ref,     # VMEM (tE, 1) int32 -- tail indices of this edge chunk
    rel_ref,      # VMEM (tE, Dp) f32  -- relation_weight[edge_type] rows
    invdeg_ref,   # VMEM (Np, 1) f32   -- 1 / max(in-degree, 1) (constant block)
    out_ref,      # VMEM (Np, Dp) f32  -- residual accumulator (resident)
    acc_s,        # VMEM (Np, Dp) f32  -- per-hop scatter accumulator
    ego_s,        # VMEM (Np, Dp) f32  -- current hop input embeddings
    *,
    n_chunks: int,
    edge_tile: int,
):
    h = pl.program_id(0)            # hop (outer, sequential)
    e = pl.program_id(1)            # edge chunk (inner, sequential reduction)
    n_nodes = acc_s.shape[0]

    # ---- one-time init (first grid step) -----------------------------------
    @pl.when(jnp.logical_and(h == 0, e == 0))
    def _init():
        ego0 = ego_ref[...]
        ego_s[...] = ego0
        out_ref[...] = ego0          # residual accumulator starts at ego

    # ---- per-hop init -------------------------------------------------------
    @pl.when(e == 0)
    def _hop_init():
        acc_s[...] = jnp.zeros_like(acc_s)

    # ---- vectorized gather ego[tail] via bf16 one-hot matmul on the MXU -----
    # Each one-hot row has exactly one 1 -> the gather is exact up to the
    # ego -> bf16 cast; accumulation is f32.
    tail_col = tail_ref[...]                                       # (tE, 1)
    gather_iota = lax.broadcasted_iota(jnp.int32, (edge_tile, n_nodes), 1)
    gsel = (gather_iota == tail_col).astype(jnp.bfloat16)          # (tE, Np)
    gathered = jnp.dot(gsel, ego_s[...].astype(jnp.bfloat16),
                       preferred_element_type=jnp.float32)         # (tE, Dp)

    # ---- per-edge relation weighting (rows precomputed in the wrapper) ------
    neigh = gathered * rel_ref[...]                                # f32 VPU

    # ---- scatter-add over head via (Np, tE) bf16 one-hot on the MXU ---------
    # head is padded with -1 (matches no node) so padded edges add nothing.
    head_row = head_ref[...]                                       # (1, tE)
    scatter_iota = lax.broadcasted_iota(jnp.int32, (n_nodes, edge_tile), 0)
    ssel = (scatter_iota == head_row).astype(jnp.bfloat16)         # (Np, tE)
    acc_s[...] = acc_s[...] + jnp.dot(ssel, neigh.astype(jnp.bfloat16),
                                      preferred_element_type=jnp.float32)

    # ---- per-hop epilogue on the last edge chunk -----------------------------
    @pl.when(e == n_chunks - 1)
    def _finish_hop():
        agg = acc_s[...] * invdeg_ref[...]            # scatter-*mean*
        sumsq = jnp.sum(agg * agg, axis=1, keepdims=True)
        # 1/max(||agg||, 1e-12) == rsqrt(max(sumsq, 1e-24)): EUP, no sqrt+div.
        inv_norm = lax.rsqrt(jnp.maximum(sumsq, 1e-24))
        agg_n = agg * inv_norm
        out_ref[...] = out_ref[...] + agg_n           # residual accumulate
        ego_s[...] = agg_n                            # next hop's input


def graph_conv_forward(ego_embed, edge_index, edge_type, relation_weight,
                       n_hops, *, edge_tile=1024):
    """GraphConv.forward with dropout=False.

    ego_embed:       (N, D)  float
    edge_index:      (2, E)  int    row 0 = head, row 1 = tail
    edge_type:       (E,)    int
    relation_weight: (R, D)  float
    """
    N, D = ego_embed.shape
    E = edge_index.shape[1]
    assert edge_tile % 128 == 0

    # TPU-friendly padding: lanes (D -> mult of 128), sublanes (N -> mult of 8),
    # edge tiles -> multiples of 128 (lane-dense head/one-hot blocks).
    Dp = _round_up(D, 128)
    Np = _round_up(N, 8)
    tE = min(edge_tile, _round_up(E, 128))
    Ep = _round_up(E, tE)
    n_chunks = Ep // tE

    f32 = jnp.float32
    head = edge_index[0].astype(jnp.int32)
    tail = edge_index[1].astype(jnp.int32)
    etype = edge_type.astype(jnp.int32)

    ego_p = jnp.zeros((Np, Dp), f32).at[:N, :D].set(ego_embed.astype(f32))

    # Per-edge relation rows precomputed once (hop invariant).  Padded edges
    # pick relw[0] -- harmless because their head is padded with -1 below.
    rel_edge = relation_weight.astype(f32)[etype]                  # (E, D)
    rel_p = jnp.zeros((Ep, Dp), f32).at[:E, :D].set(rel_edge)

    # NOTE: head MUST be padded with -1 (matches no node, so padded edges
    # contribute nothing); tail is padded with 0 (any valid row works, the
    # scatter drops it).  Do not change the head padding value.
    head_row = jnp.full((1, Ep), -1, jnp.int32).at[0, :E].set(head)
    tail_col = jnp.zeros((Ep, 1), jnp.int32).at[:E, 0].set(tail)

    # In-degree is hop invariant -> precompute inverse counts in the wrapper.
    counts = jnp.zeros((N,), f32).at[head].add(1.0)
    inv_deg = 1.0 / jnp.maximum(counts, 1.0)
    invdeg_p = jnp.zeros((Np, 1), f32).at[:N, 0].set(inv_deg)

    kernel = functools.partial(graphconv_kernel, n_chunks=n_chunks,
                               edge_tile=tE)

    grid_spec = pltpu.PrefetchScalarGridSpec(
        num_scalar_prefetch=0,
        grid=(n_hops, n_chunks),                      # hop outer, edges inner
        in_specs=[
            pl.BlockSpec((Np, Dp), lambda h, e: (0, 0)),    # ego (resident)
            pl.BlockSpec((1, tE), lambda h, e: (0, e)),     # head chunk
            pl.BlockSpec((tE, 1), lambda h, e: (e, 0)),     # tail chunk
            pl.BlockSpec((tE, Dp), lambda h, e: (e, 0)),    # relation rows
            pl.BlockSpec((Np, 1), lambda h, e: (0, 0)),     # 1 / in-degree
        ],
        out_specs=pl.BlockSpec((Np, Dp), lambda h, e: (0, 0)),
        scratch_shapes=[
            pltpu.VMEM((Np, Dp), f32),      # per-hop scatter accumulator
            pltpu.VMEM((Np, Dp), f32),      # current hop input embeddings
        ],
    )

    cost = pl.CostEstimate(
        flops=int(n_hops * (4 * Ep * Np * Dp + 2 * Ep * Dp + 4 * Np * Dp)),
        transcendentals=int(n_hops * Np),
        bytes_accessed=int(4 * (2 * Np * Dp + Np
                                + n_hops * (Ep * Dp + 2 * Ep))),
    )

    out = pl.pallas_call(
        kernel,
        out_shape=jax.ShapeDtypeStruct((Np, Dp), f32),
        grid_spec=grid_spec,
        compiler_params=pltpu.CompilerParams(
            # hop axis carries the hop->hop dependency; edge axis reduces into
            # shared accumulators -> both sequential.
            dimension_semantics=("arbitrary", "arbitrary"),
            vmem_limit_bytes=32 * 1024 * 1024,   # safe on v5e/v6e/v7x
        ),
        cost_estimate=cost,
    )(ego_p, head_row, tail_col, rel_p, invdeg_p)

    return out[:N, :D]


def _reference(ego, edge_index, edge_type, relw, n_hops):
    """Pure-JAX f32 reference of the dropout=False forward."""
    head, tail = edge_index[0], edge_index[1]
    N = ego.shape[0]
    counts = jnp.zeros((N,), jnp.float32).at[head].add(1.0)
    inv_c = (1.0 / jnp.maximum(counts, 1.0))[:, None]
    res = ego
    cur = ego
    for _ in range(n_hops):
        neigh = cur[tail] * relw[edge_type]
        agg = jnp.zeros_like(cur).at[head].add(neigh) * inv_c
        norm = jnp.sqrt(jnp.sum(agg * agg, axis=1, keepdims=True))
        agg = agg / jnp.maximum(norm, 1e-12)
        res = res + agg
        cur = agg
    return res


if __name__ == "__main__":
    # Small synthetic knowledge graph.
    N = 64        # number of entities
    E = 128       # number of edges
    R = 4         # number of relation types
    D = 32        # embed_dim
    N_HOPS = 2

    key = jax.random.PRNGKey(0)
    k_ego, k_rel, k_head, k_tail, k_type = jax.random.split(key, 5)

    ego_embed = jax.random.normal(k_ego, (N, D), dtype=jnp.float32)
    relation_weight = jax.random.normal(k_rel, (R, D), dtype=jnp.float32)
    head_idx = jax.random.randint(k_head, (E,), 0, N, dtype=jnp.int32)
    tail_idx = jax.random.randint(k_tail, (E,), 0, N, dtype=jnp.int32)
    edge_index = jnp.stack([head_idx, tail_idx], axis=0)          # (2, E)
    edge_type = jax.random.randint(k_type, (E,), 0, R, dtype=jnp.int32)

    out = graph_conv_forward(ego_embed, edge_index, edge_type,
                             relation_weight, N_HOPS)
    out = jax.block_until_ready(out)

    ref = _reference(ego_embed, edge_index, edge_type, relation_weight, N_HOPS)

    assert out.shape == (N, D)
    assert bool(jnp.all(jnp.isfinite(out)))
    assert bool(jnp.allclose(out, ref, atol=2e-2, rtol=2e-2)), \
        float(jnp.max(jnp.abs(out - ref)))
    print("KERNEL_OK")
</pallas_src>

<mosaic_0001>
module attributes {stable_mosaic.version = 11 : i64} {
  func.func @graphconv_kernel(%arg0: i32, %arg1: i32, %arg2: memref<64x128xf32, #tpu.memory_space<vmem>>, %arg3: memref<1x128xi32, #tpu.memory_space<vmem>>, %arg4: memref<128x1xi32, #tpu.memory_space<vmem>>, %arg5: memref<128x128xf32, #tpu.memory_space<vmem>>, %arg6: memref<64x1xf32, #tpu.memory_space<vmem>>, %arg7: memref<64x128xf32, #tpu.memory_space<vmem>>, %arg8: memref<64x128xf32, #tpu.memory_space<vmem>>, %arg9: memref<64x128xf32, #tpu.memory_space<vmem>>) attributes {dimension_semantics = [#tpu.dimension_semantics<arbitrary>, #tpu.dimension_semantics<arbitrary>], iteration_bounds = array<i64: 2, 1>, scalar_prefetch = 0 : i64, scratch_operands = 2 : i64, tpu.core_type = #tpu.core_type<tc>, window_params = [{pipeline_mode = #tpu.pipeline_mode<synchronous>, transform_indices = @transform_0, window_bounds = array<i64: 64, 128>}, {transform_indices = @transform_1, window_bounds = array<i64: 1, 128>}, {transform_indices = @transform_2, window_bounds = array<i64: 128, 1>}, {transform_indices = @transform_3, window_bounds = array<i64: 128, 128>}, {pipeline_mode = #tpu.pipeline_mode<synchronous>, transform_indices = @transform_4, window_bounds = array<i64: 64, 1>}, {pipeline_mode = #tpu.pipeline_mode<synchronous>, transform_indices = @transform_5, window_bounds = array<i64: 64, 128>}]} {
    %c0_i32 = arith.constant 0 : i32
    %0 = arith.cmpi eq, %arg0, %c0_i32 : i32
    %c0_i32_0 = arith.constant 0 : i32
    %1 = arith.cmpi eq, %arg1, %c0_i32_0 : i32
    %2 = arith.andi %0, %1 : i1
    %3 = arith.extui %2 : i1 to i32
    %c0_i32_1 = arith.constant 0 : i32
    %4 = arith.cmpi ne, %3, %c0_i32_1 : i32
    scf.if %4 {
      %c0_18 = arith.constant 0 : index
      %c0_19 = arith.constant 0 : index
      %35 = vector.load %arg2[%c0_18, %c0_19] : memref<64x128xf32, #tpu.memory_space<vmem>>, vector<64x128xf32>
      %c0_20 = arith.constant 0 : index
      %c0_21 = arith.constant 0 : index
      %36 = vector.load %arg9[%c0_20, %c0_21] : memref<64x128xf32, #tpu.memory_space<vmem>>, vector<64x128xf32>
      tpu.vector_store %arg9[%c0_20, %c0_21], %35 {strides = array<i32>} : memref<64x128xf32, #tpu.memory_space<vmem>>, vector<64x128xf32>,
      %c0_22 = arith.constant 0 : index
      %c0_23 = arith.constant 0 : index
      %37 = vector.load %arg7[%c0_22, %c0_23] : memref<64x128xf32, #tpu.memory_space<vmem>>, vector<64x128xf32>
      tpu.vector_store %arg7[%c0_22, %c0_23], %35 {strides = array<i32>} : memref<64x128xf32, #tpu.memory_space<vmem>>, vector<64x128xf32>,
    } else {
    }
    %c0_i32_2 = arith.constant 0 : i32
    %5 = arith.cmpi eq, %arg1, %c0_i32_2 : i32
    %6 = arith.extui %5 : i1 to i32
    %c0_i32_3 = arith.constant 0 : i32
    %7 = arith.cmpi ne, %6, %c0_i32_3 : i32
    scf.if %7 {
      %cst_18 = arith.constant 0.000000e+00 : f32
      %35 = vector.broadcast %cst_18 : f32 to vector<64x128xf32>
      %c0_19 = arith.constant 0 : index
      %c0_20 = arith.constant 0 : index
      %36 = vector.load %arg8[%c0_19, %c0_20] : memref<64x128xf32, #tpu.memory_space<vmem>>, vector<64x128xf32>
      tpu.vector_store %arg8[%c0_19, %c0_20], %35 {strides = array<i32>} : memref<64x128xf32, #tpu.memory_space<vmem>>, vector<64x128xf32>,
    } else {
    }
    %c0 = arith.constant 0 : index
    %c0_4 = arith.constant 0 : index
    %8 = vector.load %arg4[%c0, %c0_4] : memref<128x1xi32, #tpu.memory_space<vmem>>, vector<128x1xi32>
    %9 = tpu.iota {dimensions = array<i32: 1>} : vector<128x64xi32>
    %10 = vector.broadcast %8 : vector<128x1xi32> to vector<128x64xi32>
    %11 = arith.cmpi eq, %9, %10 : vector<128x64xi32>
    %12 = arith.extui %11 : vector<128x64xi1> to vector<128x64xi32>
    %13 = arith.sitofp %12 : vector<128x64xi32> to vector<128x64xf32>
    %14 = arith.truncf %13 : vector<128x64xf32> to vector<128x64xbf16>
    %c0_5 = arith.constant 0 : index
    %c0_6 = arith.constant 0 : index
    %15 = vector.load %arg9[%c0_5, %c0_6] : memref<64x128xf32, #tpu.memory_space<vmem>>, vector<64x128xf32>
    %16 = arith.truncf %15 : vector<64x128xf32> to vector<64x128xbf16>
    %cst = arith.constant dense<0.000000e+00> : vector<128x128xf32>
    %17 = tpu.matmul %14, %16, %cst {dimension_numbers = #tpu.dot_dimension_numbers<[1], [0], [0], [1], [0, 0, 1, 1], [], []>} : vector<128x64xbf16>, vector<64x128xbf16>, vector<128x128xf32> -> vector<128x128xf32>
    %c0_7 = arith.constant 0 : index
    %c0_8 = arith.constant 0 : index
    %18 = vector.load %arg5[%c0_7, %c0_8] : memref<128x128xf32, #tpu.memory_space<vmem>>, vector<128x128xf32>
    %19 = arith.mulf %17, %18 : vector<128x128xf32>
    %c0_9 = arith.constant 0 : index
    %c0_10 = arith.constant 0 : index
    %20 = vector.load %arg3[%c0_9, %c0_10] : memref<1x128xi32, #tpu.memory_space<vmem>>, vector<1x128xi32>
    %21 = tpu.iota {dimensions = array<i32: 0>} : vector<64x128xi32>
    %22 = vector.broadcast %20 : vector<1x128xi32> to vector<64x128xi32>
    %23 = arith.cmpi eq, %21, %22 : vector<64x128xi32>
    %24 = arith.extui %23 : vector<64x128xi1> to vector<64x128xi32>
    %25 = arith.sitofp %24 : vector<64x128xi32> to vector<64x128xf32>
    %26 = arith.truncf %25 : vector<64x128xf32> to vector<64x128xbf16>
    %c0_11 = arith.constant 0 : index
    %c0_12 = arith.constant 0 : index
    %27 = vector.load %arg8[%c0_11, %c0_12] : memref<64x128xf32, #tpu.memory_space<vmem>>, vector<64x128xf32>
    %28 = arith.truncf %19 : vector<128x128xf32> to vector<128x128xbf16>
    %cst_13 = arith.constant dense<0.000000e+00> : vector<64x128xf32>
    %29 = tpu.matmul %26, %28, %cst_13 {dimension_numbers = #tpu.dot_dimension_numbers<[1], [0], [0], [1], [0, 0, 1, 1], [], []>} : vector<64x128xbf16>, vector<128x128xbf16>, vector<64x128xf32> -> vector<64x128xf32>
    %30 = arith.addf %27, %29 : vector<64x128xf32>
    %c0_14 = arith.constant 0 : index
    %c0_15 = arith.constant 0 : index
    %31 = vector.load %arg8[%c0_14, %c0_15] : memref<64x128xf32, #tpu.memory_space<vmem>>, vector<64x128xf32>
    tpu.vector_store %arg8[%c0_14, %c0_15], %30 {strides = array<i32>} : memref<64x128xf32, #tpu.memory_space<vmem>>, vector<64x128xf32>,
    %c0_i32_16 = arith.constant 0 : i32
    %32 = arith.cmpi eq, %arg1, %c0_i32_16 : i32
    %33 = arith.extui %32 : i1 to i32
    %c0_i32_17 = arith.constant 0 : i32
    %34 = arith.cmpi ne, %33, %c0_i32_17 : i32
    scf.if %34 {
      %c0_18 = arith.constant 0 : index
      %c0_19 = arith.constant 0 : index
      %35 = vector.load %arg8[%c0_18, %c0_19] : memref<64x128xf32, #tpu.memory_space<vmem>>, vector<64x128xf32>
      %c0_20 = arith.constant 0 : index
      %c0_21 = arith.constant 0 : index
      %36 = vector.load %arg6[%c0_20, %c0_21] : memref<64x1xf32, #tpu.memory_space<vmem>>, vector<64x1xf32>
      %37 = vector.broadcast %36 : vector<64x1xf32> to vector<64x128xf32>
      %38 = arith.mulf %35, %37 : vector<64x128xf32>
      %39 = arith.mulf %38, %38 : vector<64x128xf32>
      %cst_22 = arith.constant dense<0.000000e+00> : vector<64xf32>
      %40 = vector.multi_reduction <add>, %39, %cst_22 [1] : vector<64x128xf32> to vector<64xf32>
      %41 = vector.shape_cast %40 : vector<64xf32> to vector<64x1xf32>
      %cst_23 = arith.constant 1.000000e-24 : f32
      %42 = vector.broadcast %cst_23 : f32 to vector<64x1xf32>
      %43 = arith.maximumf %41, %42 : vector<64x1xf32>
      %44 = math.rsqrt %43 : vector<64x1xf32>
      %45 = vector.broadcast %44 : vector<64x1xf32> to vector<64x128xf32>
      %46 = arith.mulf %38, %45 : vector<64x128xf32>
      %c0_24 = arith.constant 0 : index
      %c0_25 = arith.constant 0 : index
      %47 = vector.load %arg7[%c0_24, %c0_25] : memref<64x128xf32, #tpu.memory_space<vmem>>, vector<64x128xf32>
      %48 = arith.addf %47, %46 : vector<64x128xf32>
      %c0_26 = arith.constant 0 : index
      %c0_27 = arith.constant 0 : index
      %49 = vector.load %arg7[%c0_26, %c0_27] : memref<64x128xf32, #tpu.memory_space<vmem>>, vector<64x128xf32>
      tpu.vector_store %arg7[%c0_26, %c0_27], %48 {strides = array<i32>} : memref<64x128xf32, #tpu.memory_space<vmem>>, vector<64x128xf32>,
      %c0_28 = arith.constant 0 : index
      %c0_29 = arith.constant 0 : index
      %50 = vector.load %arg9[%c0_28, %c0_29] : memref<64x128xf32, #tpu.memory_space<vmem>>, vector<64x128xf32>
      tpu.vector_store %arg9[%c0_28, %c0_29], %46 {strides = array<i32>} : memref<64x128xf32, #tpu.memory_space<vmem>>, vector<64x128xf32>,
    } else {
    }
    return
  }
  func.func @transform_0(%arg0: i32, %arg1: i32) -> (i32, i32) {
    %c0_i32 = arith.constant 0 : i32
    %c0_i32_0 = arith.constant 0 : i32
    %c0_i32_1 = arith.constant 0 : i32
    return %c0_i32, %c0_i32_0 : i32, i32
  }
  func.func @transform_1(%arg0: i32, %arg1: i32) -> (i32, i32) {
    %c0_i32 = arith.constant 0 : i32
    %c0_i32_0 = arith.constant 0 : i32
    return %c0_i32, %arg1 : i32, i32
  }
  func.func @transform_2(%arg0: i32, %arg1: i32) -> (i32, i32) {
    %c0_i32 = arith.constant 0 : i32
    %c0_i32_0 = arith.constant 0 : i32
    return %arg1, %c0_i32 : i32, i32
  }
  func.func @transform_3(%arg0: i32, %arg1: i32) -> (i32, i32) {
    %c0_i32 = arith.constant 0 : i32
    %c0_i32_0 = arith.constant 0 : i32
    return %arg1, %c0_i32 : i32, i32
  }
  func.func @transform_4(%arg0: i32, %arg1: i32) -> (i32, i32) {
    %c0_i32 = arith.constant 0 : i32
    %c0_i32_0 = arith.constant 0 : i32
    %c0_i32_1 = arith.constant 0 : i32
    return %c0_i32, %c0_i32_0 : i32, i32
  }
  func.func @transform_5(%arg0: i32, %arg1: i32) -> (i32, i32) {
    %c0_i32 = arith.constant 0 : i32
    %c0_i32_0 = arith.constant 0 : i32
    %c0_i32_1 = arith.constant 0 : i32
    return %c0_i32, %c0_i32_0 : i32, i32
  }
}

</mosaic_0001>

<bundles_post_ra>
// kernel: tpu_custom_call.1
= control target key start
LH: loop header
LB: loop body
LE: loop exit
PB: predicated region body
PF: predicated region fallthrough
CT: control target
= control target key end

     0   :  { %10 = vsyncpa [#allocation5], 0  ;;  %s1231_s18 = smov 0   ;;  %s1233_s19 = smov 0   ;;  %s1511_s0 = inlined_call_operand.vmem [shape: f32[64,128], index: 0, kind: input, shape index: {}]   ;;  %s1512_s1 = inlined_call_operand.vmem [shape: s32[1,128], index: 1, kind: input, shape index: {}]   ;;  %s1513_s2 = inlined_call_operand.vmem [shape: s32[128,1], index: 2, kind: input, shape index: {}]   ;;  %s1514_s3 = inlined_call_operand.vmem [shape: f32[128,128], index: 3, kind: input, shape index: {}]   ;;  %s1515_s4 = inlined_call_operand.vmem [shape: f32[64,1], index: 4, kind: input, shape index: {}]   ;;  %s1516_s5 = inlined_call_operand.hbm [shape: f32[64,128], index: 5, kind: output, shape index: {}]  }
   0x1   :  { %s1235_s20 = smov 0  }
   0x2 LB: > { %s964_s21 = sadd.s32 4294967295, %s1193_s20   ;;  %s28_s22 = sadd.s32 1, %s1189_s19  ;;  %s1193_s20 = sphi %s1235_s20, %s16_s20   ;;  %s1189_s19 = sphi %s1233_s19, %s1525_s19   ;;  %s1185_s18 = sphi %s1231_s18, %s1524_s18  }
   0x3   : > { %p30_p0 = scmp.ge.s32.totalorder %s28_s22, 2  ;;  %p969_p1 = scmp.ge.s32.totalorder %s1193_s20, 1 }
   0x4   : > { %p215_p2 = scmp.lt.s32.totalorder %s1193_s20, 3 }
   0x5   : > { %s1527_s22 = smov (%p30_p0, %s28_s22), 0 }
   0x6   : > { %p216_p3 = pnand %p969_p1, %p215_p2 }
   0x7   : > { %p262_p4 = scmp.eq.s32.totalorder (!%p216_p3), %s1185_s18, 0 }
   0x8   : > { %219 = sbr.rel (%p216_p3) target bundleno = 793 (0x319), region = 40 }
   0xd   : > { %267 = sbr.rel (!%p262_p4) target bundleno = 22 (0x16), region = 44  ;;  %v268_v0 = vld [vmem:[%s1511_s0] sm:$0xff] (%p262_p4)  ;;  %v269_v1 = vld [vmem:[%s1511_s0 + $0x8] sm:$0xff] (%p262_p4)  ;;  %v270_v2 = vld [vmem:[%s1511_s0 + $0x10] sm:$0xff] (%p262_p4) }
   0xe   : > { %276 = vst [vmem:[#allocation3 + $0x30] sm:$0xff] (%p262_p4), %v268_v0  ;;  %284 = vst [vmem:[#allocation4] sm:$0xff] (%p262_p4), %v268_v0  ;;  %v271_v3 = vld [vmem:[%s1511_s0 + $0x18] sm:$0xff] (%p262_p4)  ;;  %v272_v4 = vld [vmem:[%s1511_s0 + $0x20] sm:$0xff] (%p262_p4) }
   0xf   : > { %277 = vst [vmem:[#allocation3] sm:$0xff] (%p262_p4), %v269_v1  ;;  %285 = vst [vmem:[#allocation4 + $0x8] sm:$0xff] (%p262_p4), %v269_v1  ;;  %v273_v5 = vld [vmem:[%s1511_s0 + $0x28] sm:$0xff] (%p262_p4)  ;;  %v274_v6 = vld [vmem:[%s1511_s0 + $0x30] sm:$0xff] (%p262_p4) }
  0x10   : > { %278 = vst [vmem:[#allocation3 + $0x18] sm:$0xff] (%p262_p4), %v270_v2  ;;  %286 = vst [vmem:[#allocation4 + $0x10] sm:$0xff] (%p262_p4), %v270_v2  ;;  %v275_v7 = vld [vmem:[%s1511_s0 + $0x38] sm:$0xff] (%p262_p4) }
  0x11   : > { %279 = vst [vmem:[#allocation3 + $0x10] sm:$0xff] (%p262_p4), %v271_v3  ;;  %287 = vst [vmem:[#allocation4 + $0x18] sm:$0xff] (%p262_p4), %v271_v3 }
  0x12   : > { %280 = vst [vmem:[#allocation3 + $0x8] sm:$0xff] %v272_v4  ;;  %288 = vst [vmem:[#allocation4 + $0x20] sm:$0xff] %v272_v4 }
  0x13   : > { %281 = vst [vmem:[#allocation3 + $0x20] sm:$0xff] %v273_v5  ;;  %289 = vst [vmem:[#allocation4 + $0x28] sm:$0xff] %v273_v5 }
  0x14   : > { %282 = vst [vmem:[#allocation3 + $0x28] sm:$0xff] %v274_v6  ;;  %290 = vst [vmem:[#allocation4 + $0x30] sm:$0xff] %v274_v6 }
  0x15   : > { %283 = vst [vmem:[#allocation3 + $0x38] sm:$0xff] %v275_v7  ;;  %291 = vst [vmem:[#allocation4 + $0x38] sm:$0xff] %v275_v7 }
  0x16 PF: > { %v305_v8 = vld [vmem:[%s1513_s2 + $0x10] sm:$0xff]  ;;  %v303_v9 = vld [vmem:[%s1513_s2] sm:$0xff]  ;;  %v1195_v10 = vmov 0   ;;  %v306_v11 = vld [vmem:[%s1513_s2 + $0x18] sm:$0xff]  ;;  %v319_v45 = vlaneseq  ;;  %vm437_vm4 = vcmask 523264   ;;  %v1196_v51 = vmov 0.0  }
  0x17   : > { %1126 = vset.pattern.permute.xlu1 %v1195_v10  ;;  %1125 = vset.pattern.permute.xlu0 %v1195_v10  ;;  %v304_v12 = vld [vmem:[%s1513_s2 + $0x8] sm:$0xff]  ;;  %v307_v14 = vld [vmem:[%s1513_s2 + $0x20] sm:$0xff]  ;;  %v310_v23 = vld [vmem:[%s1513_s2 + $0x38] sm:$0xff]  ;;  %s1198_s12 = smov [#allocation4]   ;;  %p1487_p5 = scmp.eq.s32.totalorder %s964_s21, 1 }
  0x18   : > { %328 = vperm.xlu1 %1126, %v305_v8   ;;  %322 = vperm.xlu0 %1125, %v303_v9   ;;  %v308_v13 = vld [vmem:[%s1513_s2 + $0x28] sm:$0xff]  ;;  %v309_v24 = vld [vmem:[%s1513_s2 + $0x30] sm:$0xff]  ;;  %v311_v29 = vld [vmem:[%s1513_s2 + $0x40] sm:$0xff]  ;;  %v1347_v46 = vand.u32 127, %v319_v45  ;;  %s883_s13 = sshll.u32 %s1198_s12, 4  ;;  %s884_s13 = int_to_ptr.vmem [resolvable:$true] %s883_s13 }
  0x19   : > { %v425_v26 = vld [vmem:[#allocation3 + $0x30] sm:$0xff]  ;;  %v312_v28 = vld [vmem:[%s1513_s2 + $0x48] sm:$0xff]  ;;  %v314_v31 = vld [vmem:[%s1513_s2 + $0x58] sm:$0xff]  ;;  %s1143_s15 = scalar_lea.vmem %s884_s13, 1024  ;;  %p1150_p9 = scmp.lt.s32.totalorder %s884_s13, %s884_s13 }
  0x1a   : > { %v430_v19 = vld [vmem:[#allocation3 + $0x20] sm:$0xff]  ;;  %v313_v32 = vld [vmem:[%s1513_s2 + $0x50] sm:$0xff]  ;;  %v316_v33 = vld [vmem:[%s1513_s2 + $0x68] sm:$0xff]  ;;  %p1144_p6 = scmp.ne.s32.totalorder %s884_s13, %s1143_s15  ;;  %p1151_p10 = scmp.lt.s32.totalorder %s1143_s15, %s1143_s15 }
  0x1b   : > { %v431_v15 = vld [vmem:[#allocation3 + $0x28] sm:$0xff]  ;;  %v427_v21 = vld [vmem:[#allocation3 + $0x18] sm:$0xff]  ;;  %v426_v27 = vld [vmem:[#allocation3] sm:$0xff] }
  0x1c   : > { %331 = vperm.xlu1 %1126, %v306_v11   ;;  %325 = vperm.xlu0 %1125, %v304_v12   ;;  %v432_v16 = vld [vmem:[#allocation3 + $0x38] sm:$0xff]  ;;  %v428_v22 = vld [vmem:[#allocation3 + $0x10] sm:$0xff]  ;;  %v433_v30 = vpack.c.bf16 %v426_v27, %v425_v26  ;;  %v315_v34 = vld [vmem:[%s1513_s2 + $0x60] sm:$0xff]  ;;  %p1145_p7 = pnand %p1144_p6, %p1487_p5  ;;  %p1152_p11 = por %p1151_p10, %p1150_p9 }
  0x1d   : > { %v429_v17 = vld [vmem:[#allocation3 + $0x8] sm:$0xff]  ;;  %v436_v18 = vpack.c.bf16 %v432_v16, %v431_v15  ;;  %v434_v25 = vpack.c.bf16 %v428_v22, %v427_v21  ;;  %v318_v35 = vld [vmem:[%s1513_s2 + $0x78] sm:$0xff]  ;;  %v317_v36 = vld [vmem:[%s1513_s2 + $0x70] sm:$0xff] }
  0x1e   : > { %v435_v20 = vpack.c.bf16 %v430_v19, %v429_v17  ;;  %v742_v37 = vld [vmem:[%s1515_s4 + $0x8] sm:$0xff]  ;;  %v741_v38 = vld [vmem:[%s1515_s4] sm:$0xff]  ;;  %v744_v39 = vld [vmem:[%s1515_s4 + $0x18] sm:$0xff]  ;;  %p1146_p8 = pneg %p1145_p7 }
  0x1f   : > { %1041 = vmatprep.subr.bf16.mxu0 %v436_v18  ;;  %v743_v40 = vld [vmem:[%s1515_s4 + $0x10] sm:$0xff]  ;;  %v746_v41 = vld [vmem:[%s1515_s4 + $0x28] sm:$0xff]  ;;  %v745_v42 = vld [vmem:[%s1515_s4 + $0x20] sm:$0xff] }
  0x20   : > { %337 = vperm.xlu1 %1126, %v308_v13   ;;  %334 = vperm.xlu0 %1125, %v307_v14   ;;  %v748_v43 = vld [vmem:[%s1515_s4 + $0x38] sm:$0xff]  ;;  %v747_v44 = vld [vmem:[%s1515_s4 + $0x30] sm:$0xff]  ;;  %v995_v26 = vld [vmem:[%s1512_s1] ss:$0 sm:$0xff]  ;;  %p1153_p12 = pnand %p1152_p11, %p1146_p8 }
  0x21   : > { %1042 = vmatpush3.bf16.msra.mxu0 %v436_v18 }
  0x22   : > { %1043 = vmatprep.subr.bf16.mxu0 %v435_v20 }
  0x24   : > { %343 = vperm.xlu1 %1126, %v310_v23   ;;  %340 = vperm.xlu0 %1125, %v309_v24   ;;  %v593_v24 = vshrl.u32 %v319_v45, 7 }
  0x25   : > { %1044 = vmatpush3.bf16.msra.mxu0 %v435_v20 }
  0x26   : > { %1045 = vmatprep.subr.bf16.mxu0 %v434_v25  ;;  %v595_v27 = vadd.s32 16, %v593_v24 }
  0x28   : > { %349 = vperm.xlu1 %1126, %v312_v28   ;;  %346 = vperm.xlu0 %1125, %v311_v29   ;;  %v596_v28 = vadd.s32 24, %v593_v24  ;;  %v1197_v29 = vmov 1.0|1.0  }
  0x29   : > { %1046 = vmatpush3.bf16.msra.mxu0 %v434_v25  ;;  %v594_v25 = vadd.s32 8, %v593_v24 }
  0x2a   : > { %1047 = vmatprep.subr.bf16.mxu0 %v433_v30 }
  0x2c   : > { %355 = vperm.xlu1 %1126, %v314_v31   ;;  %352 = vperm.xlu0 %1125, %v313_v32   ;;  %v597_v31 = vadd.s32 32, %v593_v24  ;;  %v598_v32 = vadd.s32 40, %v593_v24 }
  0x2d   : > { %1048 = vmatpush3.bf16.msra.mxu0 %v433_v30 }
  0x30   : > { %361 = vperm.xlu1 %1126, %v316_v33   ;;  %358 = vperm.xlu0 %1125, %v315_v34   ;;  %v599_v33 = vadd.s32 48, %v593_v24  ;;  %v600_v34 = vadd.s32 56, %v593_v24 }
  0x34   : > { %367 = vperm.xlu1 %1126, %v318_v35   ;;  %364 = vperm.xlu0 %1125, %v317_v36  }
  0x38   : > { %756 = vperm.xlu1 %1126, %v742_v37   ;;  %751 = vperm.xlu0 %1125, %v741_v38  }
  0x3c   : > { %766 = vperm.xlu1 %1126, %v744_v39   ;;  %761 = vperm.xlu0 %1125, %v743_v40  }
  0x40   : > { %776 = vperm.xlu1 %1126, %v746_v41   ;;  %771 = vperm.xlu0 %1125, %v745_v42  }
  0x44   : > { %786 = vperm.xlu1 %1126, %v748_v43   ;;  %781 = vperm.xlu0 %1125, %v747_v44  }
  0x93   : > { %v329_v47 = vpop.permute.xlu1 %328  ;;  %v323_v48 = vpop.permute.xlu0 %322 }
  0x94   : > { %vm371_vm0 = vcmp.eq.s32.totalorder %v1347_v46, %v329_v47  ;;  %vm369_vm1 = vcmp.eq.s32.totalorder %v1347_v46, %v323_v48 }
  0x95   : > { %v973_v52 = vsel %vm371_vm0, 1.0, %v1196_v51  ;;  %v971_v53 = vsel %vm369_vm1, 1.0, %v1196_v51  ;;  %vm605_vm1 = vcmp.eq.s32.totalorder %v593_v24, %v995_v26  ;;  %v559_v24 = vld [vmem:[%s1514_s3] sm:$0xff] }
  0x97   : > { %v332_v49 = vpop.permute.xlu1 %331  ;;  %v326_v50 = vpop.permute.xlu0 %325 }
  0x98   : > { %vm372_vm2 = vcmp.eq.s32.totalorder %v1347_v46, %v332_v49  ;;  %vm370_vm3 = vcmp.eq.s32.totalorder %v1347_v46, %v326_v50  ;;  %v573_v50 = vld [vmem:[%s1514_s3 + $0x70] sm:$0xff] }
  0x99   : > { %v974_v54 = vsel %vm372_vm2, 1.0, %v1196_v51  ;;  %v972_v55 = vsel %vm370_vm3, 1.0, %v1196_v51  ;;  %vm606_vm2 = vcmp.eq.s32.totalorder %v594_v25, %v995_v26 }
  0x9a   : > { %v418_v56 = vpack.c.bf16 %v974_v54, %v973_v52  ;;  %v417_v57 = vpack.c.bf16 %v972_v55, %v971_v53  ;;  %vm1004_vm3 = vmpackc.low %vm606_vm2, %vm605_vm1  ;;  %v574_v52 = vld [vmem:[%s1514_s3 + $0x78] sm:$0xff]  ;;  %v571_v53 = vld [vmem:[%s1514_s3 + $0x60] sm:$0xff] }
  0x9b   : > { %v338_v58 = vpop.permute.xlu1 %337  ;;  %v335_v59 = vpop.permute.xlu0 %334  ;;  %1081 = vmatprep.mubr.msk.bf16.mxu1 %vm1004_vm3, %v1197_v29  ;;  %v572_v55 = vld [vmem:[%s1514_s3 + $0x68] sm:$0xff] }
  0x9c   : > { %vm374_vm5 = vcmp.eq.s32.totalorder %v1347_v46, %v338_v58  ;;  %vm373_vm6 = vcmp.eq.s32.totalorder %v1347_v46, %v335_v59  ;;  %1049 = vmatprep.mubr.msk.bf16.mxu0 %vm437_vm4, %v417_v57  ;;  %v570_v58 = vld [vmem:[%s1514_s3 + $0x58] sm:$0xff] }
  0x9d   : > { %v976_v60 = vsel %vm374_vm5, 1.0, %v1196_v51  ;;  %v975_v61 = vsel %vm373_vm6, 1.0, %v1196_v51  ;;  %1050 = vmatmul.mubr.msk.bf16.vlgmr.msra.gmra.mxu0 %vm437_vm4, %v418_v56  ;;  %vm607_vm5 = vcmp.eq.s32.totalorder %v595_v27, %v995_v26  ;;  %vm608_vm6 = vcmp.eq.s32.totalorder %v596_v28, %v995_v26 }
  0x9e   : > { %v419_v62 = vpack.c.bf16 %v976_v60, %v975_v61 }
  0x9f   : > { %v344_v63 = vpop.permute.xlu1 %343  ;;  %v341_v0 = vpop.permute.xlu0 %340 }
  0xa0   : > { %vm376_vm7 = vcmp.eq.s32.totalorder %v1347_v46, %v344_v63  ;;  %vm375_vm8 = vcmp.eq.s32.totalorder %v1347_v46, %v341_v0  ;;  %1053 = vmatprep.mubr.msk.bf16.mxu0 %vm437_vm4, %v419_v62  ;;  %v569_v63 = vld [vmem:[%s1514_s3 + $0x50] sm:$0xff] }
  0xa1   : > { %v978_v1 = vsel %vm376_vm7, 1.0, %v1196_v51  ;;  %v977_v2 = vsel %vm375_vm8, 1.0, %v1196_v51  ;;  %vm1378_vm7 = vmpackc.low %vm608_vm6, %vm607_vm5  ;;  %vm610_vm8 = vcmp.eq.s32.totalorder %v598_v32, %v995_v26 }
  0xa2   : > { %v420_v3 = vpack.c.bf16 %v978_v1, %v977_v2  ;;  %v568_v2 = vld [vmem:[%s1514_s3 + $0x48] sm:$0xff] }
  0xa3   : > { %v350_v4 = vpop.permute.xlu1 %349  ;;  %v347_v5 = vpop.permute.xlu0 %346 }
  0xa4   : > { %vm378_vm9 = vcmp.eq.s32.totalorder %v1347_v46, %v350_v4  ;;  %vm377_vm10 = vcmp.eq.s32.totalorder %v1347_v46, %v347_v5  ;;  %v567_v4 = vld [vmem:[%s1514_s3 + $0x40] sm:$0xff] }
  0xa5   : > { %v980_v6 = vsel %vm378_vm9, 1.0, %v1196_v51  ;;  %v979_v7 = vsel %vm377_vm10, 1.0, %v1196_v51  ;;  %1054 = vmatmul.mubr.msk.bf16.gmra.mxu0 %vm437_vm4, %v420_v3  ;;  %vm611_vm10 = vcmp.eq.s32.totalorder %v599_v33, %v995_v26 }
  0xa6   : > { %v421_v8 = vpack.c.bf16 %v980_v6, %v979_v7  ;;  %v566_v7 = vld [vmem:[%s1514_s3 + $0x38] sm:$0xff] }
  0xa7   : > { %v356_v9 = vpop.permute.xlu1 %355  ;;  %v353_v10 = vpop.permute.xlu0 %352 }
  0xa8   : > { %vm380_vm11 = vcmp.eq.s32.totalorder %v1347_v46, %v356_v9  ;;  %vm379_vm12 = vcmp.eq.s32.totalorder %v1347_v46, %v353_v10  ;;  %1057 = vmatprep.mubr.msk.bf16.mxu0 %vm437_vm4, %v421_v8  ;;  %v565_v9 = vld [vmem:[%s1514_s3 + $0x30] sm:$0xff] }
  0xa9   : > { %v982_v11 = vsel %vm380_vm11, 1.0, %v1196_v51  ;;  %v981_v12 = vsel %vm379_vm12, 1.0, %v1196_v51  ;;  %vm612_vm11 = vcmp.eq.s32.totalorder %v600_v34, %v995_v26 }
  0xaa   : > { %v422_v13 = vpack.c.bf16 %v982_v11, %v981_v12  ;;  %vm1386_vm12 = vmpackc.low %vm612_vm11, %vm611_vm10  ;;  %v564_v12 = vld [vmem:[%s1514_s3 + $0x28] sm:$0xff] }
  0xab   : > { %v362_v14 = vpop.permute.xlu1 %361  ;;  %v359_v15 = vpop.permute.xlu0 %358 }
  0xac   : > { %vm382_vm13 = vcmp.eq.s32.totalorder %v1347_v46, %v362_v14  ;;  %vm381_vm14 = vcmp.eq.s32.totalorder %v1347_v46, %v359_v15  ;;  %v563_v14 = vld [vmem:[%s1514_s3 + $0x20] sm:$0xff] }
  0xad   : > { %v984_v16 = vsel %vm382_vm13, 1.0, %v1196_v51  ;;  %v983_v17 = vsel %vm381_vm14, 1.0, %v1196_v51  ;;  %1058 = vmatmul.mubr.msk.bf16.gmra.mxu0 %vm437_vm4, %v422_v13 }
  0xae   : > { %v423_v18 = vpack.c.bf16 %v984_v16, %v983_v17  ;;  %v562_v17 = vld [vmem:[%s1514_s3 + $0x18] sm:$0xff] }
  0xaf   : > { %v368_v19 = vpop.permute.xlu1 %367  ;;  %v365_v20 = vpop.permute.xlu0 %364 }
  0xb0   : > { %vm384_vm15 = vcmp.eq.s32.totalorder %v1347_v46, %v368_v19  ;;  %vm383_vm0 = vcmp.eq.s32.totalorder %v1347_v46, %v365_v20  ;;  %1061 = vmatprep.mubr.msk.bf16.mxu0 %vm437_vm4, %v423_v18  ;;  %v561_v19 = vld [vmem:[%s1514_s3 + $0x10] sm:$0xff] }
  0xb1   : > { %v986_v21 = vsel %vm384_vm15, 1.0, %v1196_v51  ;;  %v985_v22 = vsel %vm383_vm0, 1.0, %v1196_v51 }
  0xb2   : > { %v424_v23 = vpack.c.bf16 %v986_v21, %v985_v22  ;;  %v560_v22 = vld [vmem:[%s1514_s3 + $0x8] sm:$0xff] }
  0xb3   : > { %v757_v32 = vpop.permute.xlu1 %756 }
  0xb5   : > { %1062 = vmatmul.mubr.msk.bf16.gmra.mxu0 %vm437_vm4, %v424_v23  ;;  %vm609_vm4 = vcmp.eq.s32.totalorder %v597_v31, %v995_v26  ;;  %v752_v31 = vpop.permute.xlu0 %751 }
  0xb6   : > { %vm1382_vm9 = vmpackc.low %vm610_vm8, %vm609_vm4 }
  0xb9   : > { %v762_v33 = vpop.permute.xlu0 %761 }
 0x15d   : > { %v1051_v37 = vpop.f32.mrf.mxu0 }
 0x15e   : > { %v577_v23 = vmul.f32 %v1051_v37, %v561_v19 }
 0x15f   : > { %v1390_v38 = vpop.f32.mrf.mxu0 }
 0x160   : > { %v575_v27 = vmul.f32 %v559_v24, %v1390_v38 }
 0x161   : > { %v1052_v39 = vpop.f32.mrf.mxu0 }
 0x162   : > { %v578_v20 = vmul.f32 %v1052_v39, %v562_v17 }
 0x163   : > { %v499_v40 = vpop.f32.mrf.mxu0 }
 0x164   : > { %v642_v25 = vpack.c.bf16 %v578_v20, %v577_v23  ;;  %v576_v26 = vmul.f32 %v560_v22, %v499_v40 }
 0x165   : > { %v1055_v41 = vpop.f32.mrf.mxu0 }
 0x166   : > { %v581_v13 = vmul.f32 %v1055_v41, %v565_v9  ;;  %v641_v28 = vpack.c.bf16 %v576_v26, %v575_v27  ;;  %v767_v41 = vpop.permute.xlu1 %766 }
 0x167   : > { %v512_v42 = vpop.f32.mrf.mxu0 }
 0x168   : > { %v579_v18 = vmul.f32 %v563_v14, %v512_v42  ;;  %v772_v42 = vpop.permute.xlu0 %771 }
 0x169   : > { %v1056_v43 = vpop.f32.mrf.mxu0 }
 0x16a   : > { %v582_v10 = vmul.f32 %v1056_v43, %v566_v7 }
 0x16b   : > { %v515_v44 = vpop.f32.mrf.mxu0 }
 0x16c   : > { %v644_v15 = vpack.c.bf16 %v582_v10, %v581_v13  ;;  %v580_v16 = vmul.f32 %v564_v12, %v515_v44  ;;  %v847_v12 = vld [vmem:[#allocation4 + $0x10] sm:$0xff] }
 0x16d   : > { %v1059_v45 = vpop.f32.mrf.mxu0 }
 0x16e   : > { %v585_v3 = vmul.f32 %v1059_v45, %v569_v63  ;;  %v643_v21 = vpack.c.bf16 %v580_v16, %v579_v18  ;;  %v845_v18 = vld [vmem:[#allocation4] sm:$0xff] }
 0x16f   : > { %v528_v46 = vpop.f32.mrf.mxu0 }
 0x170   : > { %v583_v8 = vmul.f32 %v567_v4, %v528_v46  ;;  %v777_v46 = vpop.permute.xlu1 %776 }
 0x171   : > { %v1060_v47 = vpop.f32.mrf.mxu0 }
 0x172   : > { %v586_v0 = vmul.f32 %v1060_v47, %v570_v58 }
 0x173   : > { %v531_v48 = vpop.f32.mrf.mxu0 }
 0x174   : > { %v646_v5 = vpack.c.bf16 %v586_v0, %v585_v3  ;;  %v584_v6 = vmul.f32 %v568_v2, %v531_v48 }
 0x175   : > { %v1063_v49 = vpop.f32.mrf.mxu0 }
 0x176   : > { %v589_v56 = vmul.f32 %v1063_v49, %v573_v50  ;;  %v645_v11 = vpack.c.bf16 %v584_v6, %v583_v8  ;;  %v782_v50 = vpop.permute.xlu0 %781 }
 0x177   : > { %v544_v51 = vpop.f32.mrf.mxu0 }
 0x178   : > { %v587_v60 = vmul.f32 %v571_v53, %v544_v51 }
 0x179   : > { %v1064_v54 = vpop.f32.mrf.mxu0 }
 0x17a   : > { %v590_v57 = vmul.f32 %v1064_v54, %v574_v52 }
 0x17b   : > { %v547_v59 = vpop.f32.mrf.mxu0 }
 0x17c   : > { %v588_v61 = vmul.f32 %v572_v55, %v547_v59  ;;  %v648_v62 = vpack.c.bf16 %v590_v57, %v589_v56  ;;  %v787_v56 = vpop.permute.xlu1 %786 }
 0x17e   : > { %v647_v1 = vpack.c.bf16 %v588_v61, %v587_v60  ;;  %1065 = vmatprep.subr.bf16.mxu1 %v648_v62 }
 0x17f   : > { %1066 = vmatpush3.bf16.msra.mxu1 %v648_v62 }
 0x180   : > { %1067 = vmatprep.subr.bf16.mxu1 %v647_v1 }
 0x183   : > { %1068 = vmatpush3.bf16.msra.mxu1 %v647_v1 }
 0x184   : > { %1069 = vmatprep.subr.bf16.mxu1 %v646_v5 }
 0x187   : > { %1070 = vmatpush3.bf16.msra.mxu1 %v646_v5 }
 0x188   : > { %1071 = vmatprep.subr.bf16.mxu1 %v645_v11 }
 0x18b   : > { %1072 = vmatpush3.bf16.msra.mxu1 %v645_v11 }
 0x18c   : > { %1073 = vmatprep.subr.bf16.mxu1 %v644_v15 }
 0x18f   : > { %1074 = vmatpush3.bf16.msra.mxu1 %v644_v15 }
 0x190   : > { %1075 = vmatprep.subr.bf16.mxu1 %v643_v21 }
 0x193   : > { %1076 = vmatpush3.bf16.msra.mxu1 %v643_v21  ;;  %v846_v21 = vld [vmem:[#allocation4 + $0x8] sm:$0xff] }
 0x194   : > { %1077 = vmatprep.subr.bf16.mxu1 %v642_v25 }
 0x197   : > { %1078 = vmatpush3.bf16.msra.mxu1 %v642_v25  ;;  %v848_v25 = vld [vmem:[#allocation4 + $0x18] sm:$0xff] }
 0x198   : > { %1079 = vmatprep.subr.bf16.mxu1 %v641_v28 }
 0x19b   : > { %1080 = vmatpush3.bf16.msra.mxu1 %v641_v28 }
 0x19e   : > { %1082 = vmatmul.mubr.msk.bf16.vlgmr.msra.gmra.mxu1 %vm1378_vm7, %v1197_v29 }
 0x19f   : > { %1085 = vmatprep.mubr.msk.bf16.mxu1 %vm1382_vm9, %v1197_v29 }
 0x1a6   : > { %1086 = vmatmul.mubr.msk.bf16.gmra.mxu1 %vm1386_vm12, %v1197_v29 }
 0x25e   : > { %v1083_v34 = vpop.f32.mrf.mxu1 }
 0x25f   : > { %v791_v37 = vmul.f32 %v1083_v34, %v762_v33 }
 0x260   : > { %v683_v38 = vpop.f32.mrf.mxu1 }
 0x261   : > { %v1450_v39 = vmul.f32 %v752_v31, %v683_v38  ;;  %v799_v40 = vmul.f32 %v791_v37, %v791_v37  ;;  %v849_v31 = vld [vmem:[#allocation4 + $0x20] sm:$0xff]  ;;  %v851_v38 = vld [vmem:[#allocation4 + $0x30] sm:$0xff] }
 0x262   : > { %v1084_v30 = vpop.f32.mrf.mxu1 }
 0x263   : > { %809 = vadd.xlane.f32.xlu0 %v799_v40  ;;  %v1452_v35 = vmul.f32 %v1084_v30, %v767_v41  ;;  %v797_v29 = vmul.f32 %v1450_v39, %v1450_v39  ;;  %v850_v41 = vld [vmem:[#allocation4 + $0x28] sm:$0xff] }
 0x264   : > { %v686_v43 = vpop.f32.mrf.mxu1 }
 0x265   : > { %v1454_v44 = vmul.f32 %v757_v32, %v686_v43  ;;  %v800_v49 = vmul.f32 %v1452_v35, %v1452_v35 }
 0x266   : > { %v1087_v36 = vpop.f32.mrf.mxu1 }
 0x267   : > { %805 = vadd.xlane.f32.xlu0 %v797_v29  ;;  %v798_v45 = vmul.f32 %v1454_v44, %v1454_v44  ;;  %v1464_v52 = vmul.f32 %v1087_v36, %v782_v50 }
 0x268   : > { %v699_v47 = vpop.f32.mrf.mxu1 }
 0x269   : > { %v1460_v48 = vmul.f32 %v772_v42, %v699_v47  ;;  %807 = vadd.xlane.f32.xlu1 %v798_v45  ;;  %v803_v59 = vmul.f32 %v1464_v52, %v1464_v52 }
 0x26a   : > { %v1088_v51 = vpop.f32.mrf.mxu1 }
 0x26b   : > { %811 = vadd.xlane.f32.xlu0 %v800_v49  ;;  %v801_v53 = vmul.f32 %v1460_v48, %v1460_v48  ;;  %v1470_v57 = vmul.f32 %v1088_v51, %v787_v56 }
 0x26c   : > { %v702_v54 = vpop.f32.mrf.mxu1 }
 0x26d   : > { %v1468_v55 = vmul.f32 %v777_v46, %v702_v54  ;;  %813 = vadd.xlane.f32.xlu1 %v801_v53  ;;  %v804_v60 = vmul.f32 %v1470_v57, %v1470_v57 }
 0x26f   : > { %v802_v58 = vmul.f32 %v1468_v55, %v1468_v55 }
 0x271   : > { %815 = vadd.xlane.f32.xlu0 %v802_v58  ;;  %817 = vadd.xlane.f32.xlu1 %v803_v59 }
 0x275   : > { %819 = vadd.xlane.f32.xlu0 %v804_v60 }
 0x2ec   : > { %v810_v61 = vpop.xlane.xlu0 %809 }
 0x2ed   : > { %v823_v62 = vmax.f32 %v810_v61, 1e-24 }
 0x2ef   : > { %1127 = vrsqrt.f32 %v823_v62 }
 0x2f0   : > { %v806_v63 = vpop.xlane.xlu0 %805 }
 0x2f1   : > { %v821_v0 = vmax.f32 %v806_v63, 1e-24 }
 0x2f2   : > { %v808_v1 = vpop.xlane.xlu1 %807 }
 0x2f3   : > { %1129 = vrsqrt.f32 %v821_v0  ;;  %v822_v2 = vmax.f32 %v808_v1, 1e-24 }
 0x2f4   : > { %v812_v3 = vpop.xlane.xlu0 %811 }
 0x2f5   : > { %1131 = vrsqrt.f32 %v822_v2  ;;  %v824_v4 = vmax.f32 %v812_v3, 1e-24 }
 0x2f6   : > { %v814_v5 = vpop.xlane.xlu1 %813 }
 0x2f7   : > { %1133 = vrsqrt.f32 %v824_v4  ;;  %v825_v6 = vmax.f32 %v814_v5, 1e-24 }
 0x2f9   : > { %1135 = vrsqrt.f32 %v825_v6 }
 0x2fa   : > { %v818_v7 = vpop.xlane.xlu1 %817  ;;  %v816_v8 = vpop.xlane.xlu0 %815 }
 0x2fb   : > { %v827_v9 = vmax.f32 %v818_v7, 1e-24  ;;  %v826_v10 = vmax.f32 %v816_v8, 1e-24 }
 0x2fc   : > { %v1128_v11 = vpop.eup %1127 }
 0x2fd   : > { %v839_v13 = vmul.f32 %v1128_v11, %v791_v37  ;;  %1137 = vrsqrt.f32 %v827_v9 }
 0x2fe   : > { %1139 = vrsqrt.f32 %v826_v10  ;;  %v820_v14 = vpop.xlane.xlu0 %819 }
 0x2ff   : > { %v855_v15 = vadd.f32 %v847_v12, %v839_v13  ;;  %871 = vst [vmem:[#allocation3 + $0x18] sm:$0xff] %v839_v13  ;;  %v828_v16 = vmax.f32 %v820_v14, 1e-24 }
 0x300   : > { %v1130_v17 = vpop.eup %1129 }
 0x301   : > { %863 = vst [vmem:[#allocation4 + $0x10] sm:$0xff] %v855_v15  ;;  %v837_v19 = vmul.f32 %v1130_v17, %v1450_v39  ;;  %1141 = vrsqrt.f32 %v828_v16 }
 0x302   : > { %v1132_v20 = vpop.eup %1131 }
 0x303   : > { %v853_v22 = vadd.f32 %v845_v18, %v837_v19  ;;  %869 = vst [vmem:[#allocation3 + $0x30] sm:$0xff] %v837_v19  ;;  %v838_v23 = vmul.f32 %v1132_v20, %v1454_v44  ;;  %v852_v44 = vld [vmem:[#allocation4 + $0x38] sm:$0xff] }
 0x304   : > { %v1134_v24 = vpop.eup %1133 }
 0x305   : > { %861 = vst [vmem:[#allocation4] sm:$0xff] %v853_v22  ;;  %v854_v26 = vadd.f32 %v846_v21, %v838_v23  ;;  %870 = vst [vmem:[#allocation3] sm:$0xff] %v838_v23  ;;  %v840_v27 = vmul.f32 %v1134_v24, %v1452_v35 }
 0x306   : > { %v1136_v28 = vpop.eup %1135 }
 0x307   : > { %862 = vst [vmem:[#allocation4 + $0x8] sm:$0xff] %v854_v26  ;;  %v856_v32 = vadd.f32 %v848_v25, %v840_v27  ;;  %872 = vst [vmem:[#allocation3 + $0x10] sm:$0xff] %v840_v27  ;;  %v841_v33 = vmul.f32 %v1136_v28, %v1460_v48 }
 0x309   : > { %864 = vst [vmem:[#allocation4 + $0x18] sm:$0xff] %v856_v32  ;;  %v857_v34 = vadd.f32 %v849_v31, %v841_v33  ;;  %873 = vst [vmem:[#allocation3 + $0x8] sm:$0xff] %v841_v33 }
 0x30a   : > { %v1138_v37 = vpop.eup %1137 }
 0x30b   : > { %v1140_v39 = vpop.eup %1139  ;;  %865 = vst [vmem:[#allocation4 + $0x20] sm:$0xff] %v857_v34  ;;  %v843_v40 = vmul.f32 %v1138_v37, %v1464_v52 }
 0x30c   : > { %v842_v30 = vmul.f32 %v1140_v39, %v1468_v55 }
 0x30d   : > { %v859_v42 = vadd.f32 %v851_v38, %v843_v40  ;;  %875 = vst [vmem:[#allocation3 + $0x28] sm:$0xff] %v843_v40 }
 0x30e   : > { %v1142_v43 = vpop.eup %1141  ;;  %v858_v35 = vadd.f32 %v850_v41, %v842_v30  ;;  %874 = vst [vmem:[#allocation3 + $0x20] sm:$0xff] %v842_v30 }
 0x30f   : > { %867 = vst [vmem:[#allocation4 + $0x30] sm:$0xff] %v859_v42  ;;  %v844_v29 = vmul.f32 %v1142_v43, %v1470_v57 }
 0x310   : > { %866 = vst [vmem:[#allocation4 + $0x28] sm:$0xff] %v858_v35 }
 0x311   : > { %v860_v36 = vadd.f32 %v852_v44, %v844_v29  ;;  %876 = vst [vmem:[#allocation3 + $0x38] sm:$0xff] %v844_v29 }
 0x313   : > { %868 = vst [vmem:[#allocation4 + $0x38] sm:$0xff] %v860_v36 }
 0x314   : > { %1156 = shalt.err (!%p1153_p12)
}
 0x315   : > { %s1199_s16 = smov 128   ;;  %s1200_s21 = smov 8  }
 0x316   : > { %1090 = dma.vmem_to_hbm [thread:$0]  (%p1487_p5), %s884_s13, 1024, %s1516_s5, [#allocation5], %s1199_s16, %s1199_s16, %s1200_s21  }
 0x317   : > { %1180 = dma.done.wait (%p1487_p5), [#allocation5], 1024  }
 0x318   : > { %1182 = vsyncadd (%p1487_p5), [#allocation5], 4294966272 }
 0x319 PF: > { %s16_s20 = sadd.s32 1, %s1193_s20   ;;  %s1524_s18 = smov %s1189_s19 }
 0x31a   : > { %p13_p13 = scmp.ge.s32.totalorder %s16_s20, 4   ;;  %s1525_s19 = smov %s1527_s22 }
 0x31c   :  { %15 = sbr.rel (!%p13_p13) target bundleno = 2 (0x2), region = 85 }
 0x321   :  { %899 = vsyncpa [#allocation5], 1 }
 0x322   :  { %901 = vsyncpa [#allocation5 + $0x1], 1 }

</bundles_post_ra>
